<compile_context>
chip_gen: v7x
topology: tpu7x:2x2x1
jax: 0.10.0
libtpu: 0.0.40
codegen_flags: <defaults>
</compile_context>

<pallas_src>
import jax
import jax.numpy as jnp
from jax.experimental import pallas as pl
from jax.experimental.pallas import tpu as pltpu


def ladder_conv(x_nchw, weight, bias):
    """x_nchw: (N, Cin, H, W); weight: (3, Cout, Cin); bias: (Cout,).
    Returns (N, Cout, H-1, W-1), matching F.conv2d with the ladder 2x2 kernel."""
    N, Cin, H, W = x_nchw.shape
    _, Cout, _ = weight.shape
    HW = H * W
    assert H >= 2 and W >= 2, "ladder conv needs H, W >= 2 (roll-wrap trick)"

    # Lane-dense host-side layouts (cheap XLA reshapes on tiny arrays):
    #   x : (N*Cin, H*W)   spatial plane on the lane axis
    #   w : (Cout, 3*Cin)  w2d[co, t*Cin+ci] = weight[t, co, ci]
    #   b : (Cout, 1)
    x2d = x_nchw.reshape(N * Cin, HW)
    w2d = jnp.transpose(weight.astype(jnp.float32), (1, 0, 2)).reshape(Cout, 3 * Cin)
    b2d = bias.astype(jnp.float32).reshape(Cout, 1)

    def kernel(x_ref, w_ref, b_ref, o_ref):
        # x_ref: (N*Cin, HW)  VMEM
        # w_ref: (Cout, 3*Cin) VMEM   b_ref: (Cout, 1) VMEM
        # o_ref: (N, Cout, HW) VMEM  (full planes; crop happens in the wrapper)
        x00 = x_ref[...].astype(jnp.float32)            # tap (i  , j  )
        # Flat-axis rolls (XLU slot): rolled[f] = x[(f + W) mod HW] etc.
        # The wrap only affects flat positions in the last row/column, which
        # are cropped out of the (H-1, W-1) output window.
        x10 = pltpu.roll(x00, shift=HW - W, axis=1)     # tap (i+1, j  )
        x11 = pltpu.roll(x00, shift=HW - W - 1, axis=1)  # tap (i+1, j+1)

        w = w_ref[...]                                   # (Cout, 3*Cin), f32
        # Hoisted broadcasts (JAX does not CSE broadcast_in_dim): 3*Cin weight
        # columns lane-splat once, bias lane-splat once; reused for every n.
        w_planes = [jnp.broadcast_to(w[:, k:k + 1], (Cout, HW))
                    for k in range(3 * Cin)]
        bias_slab = jnp.broadcast_to(b_ref[...].astype(jnp.float32), (Cout, HW))

        # TODO(synk): if Cin grows, loop ci outermost / recompute taps per ci so
        # only one ci's tap planes stay live (regalloc headroom, avoid spills).
        for n in range(N):
            acc = bias_slab                              # bias-initialized accumulator
            for ci in range(Cin):
                r = n * Cin + ci
                p00 = x00[r][None, :]                    # (1, HW) sublane-broadcast rows
                p10 = x10[r][None, :]
                p11 = x11[r][None, :]
                acc = (acc
                       + w_planes[0 * Cin + ci] * p00
                       + w_planes[1 * Cin + ci] * p10
                       + w_planes[2 * Cin + ci] * p11)
            o_ref[n] = acc.astype(o_ref.dtype)           # full-tile, unmasked store

    itemsize = jnp.dtype(x_nchw.dtype).itemsize
    in_bytes = N * Cin * HW * itemsize + (3 * Cout * Cin + Cout) * 4
    out_bytes = N * Cout * HW * itemsize
    flops = 2 * 3 * N * Cout * Cin * (H - 1) * (W - 1)
    # Blocks + f32 working set with generous headroom; clamp to <= 64 MiB (v7x).
    vmem_limit = int(min(max(4 * (in_bytes + out_bytes) + (2 << 20), 16 << 20),
                         64 << 20))

    out_flat = pl.pallas_call(
        kernel,
        out_shape=jax.ShapeDtypeStruct((N, Cout, HW), x_nchw.dtype),
        grid_spec=pltpu.PrefetchScalarGridSpec(
            num_scalar_prefetch=0,
            grid=(1,),   # whole batch fused into one step (overhead-bound at N=2)
            in_specs=[
                pl.BlockSpec((N * Cin, HW), lambda i: (0, 0)),
                pl.BlockSpec((Cout, 3 * Cin), lambda i: (0, 0)),
                pl.BlockSpec((Cout, 1), lambda i: (0, 0)),
            ],
            out_specs=pl.BlockSpec((N, Cout, HW), lambda i: (0, 0, 0)),
        ),
        compiler_params=pltpu.CompilerParams(
            dimension_semantics=("arbitrary",),
            vmem_limit_bytes=vmem_limit),
        cost_estimate=pl.CostEstimate(
            flops=flops, transcendentals=0,
            bytes_accessed=in_bytes + out_bytes),
    )(x2d, w2d, b2d)

    # Crop the invalid last row/column in XLA (one cheap slice).
    return out_flat.reshape(N, Cout, H, W)[:, :, :H - 1, :W - 1]


def ladder_conv_reference(x_nchw, weight, bias):
    """Pure-JAX reference (same math, no Pallas)."""
    w0, w1, w2 = weight[0], weight[1], weight[2]        # (Cout, Cin)
    x00 = x_nchw[:, :, :-1, :-1]
    x10 = x_nchw[:, :, 1:, :-1]
    x11 = x_nchw[:, :, 1:, 1:]
    out = (jnp.einsum('nchw,oc->nohw', x00, w0)
           + jnp.einsum('nchw,oc->nohw', x10, w1)
           + jnp.einsum('nchw,oc->nohw', x11, w2))
    return out + bias[None, :, None, None]


if __name__ == "__main__":
    key = jax.random.PRNGKey(0)
    k_x, k_w = jax.random.split(key)

    # Small shapes consistent with the module's forward (NCHW input).
    N, Cin, H, W = 2, 4, 16, 16
    Cout = 8

    x = jax.random.normal(k_x, (N, Cin, H, W), dtype=jnp.float32)

    # Deterministic kaiming_normal_-style init on (3, Cout, Cin):
    # PyTorch fan_in for this shape = size(1) * receptive_field = Cout * Cin.
    fan_in = Cout * Cin
    std = (2.0 / fan_in) ** 0.5
    weight = std * jax.random.normal(k_w, (3, Cout, Cin), dtype=jnp.float32)
    bias = jnp.zeros((Cout,), dtype=jnp.float32)

    out = ladder_conv(x, weight, bias)
    out = jax.block_until_ready(out)

    ref = ladder_conv_reference(x, weight, bias)
    assert out.shape == (N, Cout, H - 1, W - 1), out.shape
    assert jnp.allclose(out, ref, atol=1e-5, rtol=1e-5), "mismatch vs reference"

    print("KERNEL_OK")
</pallas_src>

<mosaic_0001>
module attributes {stable_mosaic.version = 11 : i64} {
  func.func @kernel(%arg0: i32, %arg1: memref<8x256xf32, #tpu.memory_space<vmem>>, %arg2: memref<8x12xf32, #tpu.memory_space<vmem>>, %arg3: memref<8x1xf32, #tpu.memory_space<vmem>>, %arg4: memref<2x8x256xf32, #tpu.memory_space<vmem>>) attributes {dimension_semantics = [#tpu.dimension_semantics<arbitrary>], iteration_bounds = array<i64: 1>, scalar_prefetch = 0 : i64, scratch_operands = 0 : i64, tpu.core_type = #tpu.core_type<tc>, window_params = [{pipeline_mode = #tpu.pipeline_mode<synchronous>, transform_indices = @transform_0, window_bounds = array<i64: 8, 256>}, {pipeline_mode = #tpu.pipeline_mode<synchronous>, transform_indices = @transform_1, window_bounds = array<i64: 8, 12>}, {pipeline_mode = #tpu.pipeline_mode<synchronous>, transform_indices = @transform_2, window_bounds = array<i64: 8, 1>}, {pipeline_mode = #tpu.pipeline_mode<synchronous>, transform_indices = @transform_3, window_bounds = array<i64: 2, 8, 256>}]} {
    %c0 = arith.constant 0 : index
    %c0_0 = arith.constant 0 : index
    %0 = vector.load %arg1[%c0, %c0_0] : memref<8x256xf32, #tpu.memory_space<vmem>>, vector<8x256xf32>
    %c240_i32 = arith.constant 240 : i32
    %1 = tpu.dynamic_rotate %0 by %c240_i32 dim 1 : vector<8x256xf32>, i32 -> vector<8x256xf32>
    %c239_i32 = arith.constant 239 : i32
    %2 = tpu.dynamic_rotate %0 by %c239_i32 dim 1 : vector<8x256xf32>, i32 -> vector<8x256xf32>
    %c0_1 = arith.constant 0 : index
    %c0_2 = arith.constant 0 : index
    %3 = vector.load %arg2[%c0_1, %c0_2] : memref<8x12xf32, #tpu.memory_space<vmem>>, vector<8x12xf32>
    %4 = vector.extract_strided_slice %3 {offsets = [0, 0], sizes = [8, 1], strides = [1, 1]} : vector<8x12xf32> to vector<8x1xf32>
    %5 = vector.shape_cast %4 : vector<8x1xf32> to vector<8x1xf32>
    %6 = vector.broadcast %5 : vector<8x1xf32> to vector<8x256xf32>
    %7 = vector.extract_strided_slice %3 {offsets = [0, 1], sizes = [8, 1], strides = [1, 1]} : vector<8x12xf32> to vector<8x1xf32>
    %8 = vector.shape_cast %7 : vector<8x1xf32> to vector<8x1xf32>
    %9 = vector.broadcast %8 : vector<8x1xf32> to vector<8x256xf32>
    %10 = vector.extract_strided_slice %3 {offsets = [0, 2], sizes = [8, 1], strides = [1, 1]} : vector<8x12xf32> to vector<8x1xf32>
    %11 = vector.shape_cast %10 : vector<8x1xf32> to vector<8x1xf32>
    %12 = vector.broadcast %11 : vector<8x1xf32> to vector<8x256xf32>
    %13 = vector.extract_strided_slice %3 {offsets = [0, 3], sizes = [8, 1], strides = [1, 1]} : vector<8x12xf32> to vector<8x1xf32>
    %14 = vector.shape_cast %13 : vector<8x1xf32> to vector<8x1xf32>
    %15 = vector.broadcast %14 : vector<8x1xf32> to vector<8x256xf32>
    %16 = vector.extract_strided_slice %3 {offsets = [0, 4], sizes = [8, 1], strides = [1, 1]} : vector<8x12xf32> to vector<8x1xf32>
    %17 = vector.shape_cast %16 : vector<8x1xf32> to vector<8x1xf32>
    %18 = vector.broadcast %17 : vector<8x1xf32> to vector<8x256xf32>
    %19 = vector.extract_strided_slice %3 {offsets = [0, 5], sizes = [8, 1], strides = [1, 1]} : vector<8x12xf32> to vector<8x1xf32>
    %20 = vector.shape_cast %19 : vector<8x1xf32> to vector<8x1xf32>
    %21 = vector.broadcast %20 : vector<8x1xf32> to vector<8x256xf32>
    %22 = vector.extract_strided_slice %3 {offsets = [0, 6], sizes = [8, 1], strides = [1, 1]} : vector<8x12xf32> to vector<8x1xf32>
    %23 = vector.shape_cast %22 : vector<8x1xf32> to vector<8x1xf32>
    %24 = vector.broadcast %23 : vector<8x1xf32> to vector<8x256xf32>
    %25 = vector.extract_strided_slice %3 {offsets = [0, 7], sizes = [8, 1], strides = [1, 1]} : vector<8x12xf32> to vector<8x1xf32>
    %26 = vector.shape_cast %25 : vector<8x1xf32> to vector<8x1xf32>
    %27 = vector.broadcast %26 : vector<8x1xf32> to vector<8x256xf32>
    %28 = vector.extract_strided_slice %3 {offsets = [0, 8], sizes = [8, 1], strides = [1, 1]} : vector<8x12xf32> to vector<8x1xf32>
    %29 = vector.shape_cast %28 : vector<8x1xf32> to vector<8x1xf32>
    %30 = vector.broadcast %29 : vector<8x1xf32> to vector<8x256xf32>
    %31 = vector.extract_strided_slice %3 {offsets = [0, 9], sizes = [8, 1], strides = [1, 1]} : vector<8x12xf32> to vector<8x1xf32>
    %32 = vector.shape_cast %31 : vector<8x1xf32> to vector<8x1xf32>
    %33 = vector.broadcast %32 : vector<8x1xf32> to vector<8x256xf32>
    %34 = vector.extract_strided_slice %3 {offsets = [0, 10], sizes = [8, 1], strides = [1, 1]} : vector<8x12xf32> to vector<8x1xf32>
    %35 = vector.shape_cast %34 : vector<8x1xf32> to vector<8x1xf32>
    %36 = vector.broadcast %35 : vector<8x1xf32> to vector<8x256xf32>
    %37 = vector.extract_strided_slice %3 {offsets = [0, 11], sizes = [8, 1], strides = [1, 1]} : vector<8x12xf32> to vector<8x1xf32>
    %38 = vector.shape_cast %37 : vector<8x1xf32> to vector<8x1xf32>
    %39 = vector.broadcast %38 : vector<8x1xf32> to vector<8x256xf32>
    %c0_3 = arith.constant 0 : index
    %c0_4 = arith.constant 0 : index
    %40 = vector.load %arg3[%c0_3, %c0_4] : memref<8x1xf32, #tpu.memory_space<vmem>>, vector<8x1xf32>
    %41 = vector.shape_cast %40 : vector<8x1xf32> to vector<8x1xf32>
    %42 = vector.broadcast %41 : vector<8x1xf32> to vector<8x256xf32>
    %43 = vector.extract_strided_slice %0 {offsets = [0, 0], sizes = [1, 256], strides = [1, 1]} : vector<8x256xf32> to vector<1x256xf32>
    %44 = vector.shape_cast %43 : vector<1x256xf32> to vector<256xf32>
    %45 = vector.shape_cast %44 : vector<256xf32> to vector<1x256xf32>
    %46 = vector.extract_strided_slice %1 {offsets = [0, 0], sizes = [1, 256], strides = [1, 1]} : vector<8x256xf32> to vector<1x256xf32>
    %47 = vector.shape_cast %46 : vector<1x256xf32> to vector<256xf32>
    %48 = vector.shape_cast %47 : vector<256xf32> to vector<1x256xf32>
    %49 = vector.extract_strided_slice %2 {offsets = [0, 0], sizes = [1, 256], strides = [1, 1]} : vector<8x256xf32> to vector<1x256xf32>
    %50 = vector.shape_cast %49 : vector<1x256xf32> to vector<256xf32>
    %51 = vector.shape_cast %50 : vector<256xf32> to vector<1x256xf32>
    %52 = vector.broadcast %45 : vector<1x256xf32> to vector<8x256xf32>
    %53 = arith.mulf %6, %52 : vector<8x256xf32>
    %54 = arith.addf %42, %53 : vector<8x256xf32>
    %55 = vector.broadcast %48 : vector<1x256xf32> to vector<8x256xf32>
    %56 = arith.mulf %18, %55 : vector<8x256xf32>
    %57 = arith.addf %54, %56 : vector<8x256xf32>
    %58 = vector.broadcast %51 : vector<1x256xf32> to vector<8x256xf32>
    %59 = arith.mulf %30, %58 : vector<8x256xf32>
    %60 = arith.addf %57, %59 : vector<8x256xf32>
    %61 = vector.extract_strided_slice %0 {offsets = [1, 0], sizes = [1, 256], strides = [1, 1]} : vector<8x256xf32> to vector<1x256xf32>
    %62 = vector.shape_cast %61 : vector<1x256xf32> to vector<256xf32>
    %63 = vector.shape_cast %62 : vector<256xf32> to vector<1x256xf32>
    %64 = vector.extract_strided_slice %1 {offsets = [1, 0], sizes = [1, 256], strides = [1, 1]} : vector<8x256xf32> to vector<1x256xf32>
    %65 = vector.shape_cast %64 : vector<1x256xf32> to vector<256xf32>
    %66 = vector.shape_cast %65 : vector<256xf32> to vector<1x256xf32>
    %67 = vector.extract_strided_slice %2 {offsets = [1, 0], sizes = [1, 256], strides = [1, 1]} : vector<8x256xf32> to vector<1x256xf32>
    %68 = vector.shape_cast %67 : vector<1x256xf32> to vector<256xf32>
    %69 = vector.shape_cast %68 : vector<256xf32> to vector<1x256xf32>
    %70 = vector.broadcast %63 : vector<1x256xf32> to vector<8x256xf32>
    %71 = arith.mulf %9, %70 : vector<8x256xf32>
    %72 = arith.addf %60, %71 : vector<8x256xf32>
    %73 = vector.broadcast %66 : vector<1x256xf32> to vector<8x256xf32>
    %74 = arith.mulf %21, %73 : vector<8x256xf32>
    %75 = arith.addf %72, %74 : vector<8x256xf32>
    %76 = vector.broadcast %69 : vector<1x256xf32> to vector<8x256xf32>
    %77 = arith.mulf %33, %76 : vector<8x256xf32>
    %78 = arith.addf %75, %77 : vector<8x256xf32>
    %79 = vector.extract_strided_slice %0 {offsets = [2, 0], sizes = [1, 256], strides = [1, 1]} : vector<8x256xf32> to vector<1x256xf32>
    %80 = vector.shape_cast %79 : vector<1x256xf32> to vector<256xf32>
    %81 = vector.shape_cast %80 : vector<256xf32> to vector<1x256xf32>
    %82 = vector.extract_strided_slice %1 {offsets = [2, 0], sizes = [1, 256], strides = [1, 1]} : vector<8x256xf32> to vector<1x256xf32>
    %83 = vector.shape_cast %82 : vector<1x256xf32> to vector<256xf32>
    %84 = vector.shape_cast %83 : vector<256xf32> to vector<1x256xf32>
    %85 = vector.extract_strided_slice %2 {offsets = [2, 0], sizes = [1, 256], strides = [1, 1]} : vector<8x256xf32> to vector<1x256xf32>
    %86 = vector.shape_cast %85 : vector<1x256xf32> to vector<256xf32>
    %87 = vector.shape_cast %86 : vector<256xf32> to vector<1x256xf32>
    %88 = vector.broadcast %81 : vector<1x256xf32> to vector<8x256xf32>
    %89 = arith.mulf %12, %88 : vector<8x256xf32>
    %90 = arith.addf %78, %89 : vector<8x256xf32>
    %91 = vector.broadcast %84 : vector<1x256xf32> to vector<8x256xf32>
    %92 = arith.mulf %24, %91 : vector<8x256xf32>
    %93 = arith.addf %90, %92 : vector<8x256xf32>
    %94 = vector.broadcast %87 : vector<1x256xf32> to vector<8x256xf32>
    %95 = arith.mulf %36, %94 : vector<8x256xf32>
    %96 = arith.addf %93, %95 : vector<8x256xf32>
    %97 = vector.extract_strided_slice %0 {offsets = [3, 0], sizes = [1, 256], strides = [1, 1]} : vector<8x256xf32> to vector<1x256xf32>
    %98 = vector.shape_cast %97 : vector<1x256xf32> to vector<256xf32>
    %99 = vector.shape_cast %98 : vector<256xf32> to vector<1x256xf32>
    %100 = vector.extract_strided_slice %1 {offsets = [3, 0], sizes = [1, 256], strides = [1, 1]} : vector<8x256xf32> to vector<1x256xf32>
    %101 = vector.shape_cast %100 : vector<1x256xf32> to vector<256xf32>
    %102 = vector.shape_cast %101 : vector<256xf32> to vector<1x256xf32>
    %103 = vector.extract_strided_slice %2 {offsets = [3, 0], sizes = [1, 256], strides = [1, 1]} : vector<8x256xf32> to vector<1x256xf32>
    %104 = vector.shape_cast %103 : vector<1x256xf32> to vector<256xf32>
    %105 = vector.shape_cast %104 : vector<256xf32> to vector<1x256xf32>
    %106 = vector.broadcast %99 : vector<1x256xf32> to vector<8x256xf32>
    %107 = arith.mulf %15, %106 : vector<8x256xf32>
    %108 = arith.addf %96, %107 : vector<8x256xf32>
    %109 = vector.broadcast %102 : vector<1x256xf32> to vector<8x256xf32>
    %110 = arith.mulf %27, %109 : vector<8x256xf32>
    %111 = arith.addf %108, %110 : vector<8x256xf32>
    %112 = vector.broadcast %105 : vector<1x256xf32> to vector<8x256xf32>
    %113 = arith.mulf %39, %112 : vector<8x256xf32>
    %114 = arith.addf %111, %113 : vector<8x256xf32>
    %c0_5 = arith.constant 0 : index
    %c0_6 = arith.constant 0 : index
    %c0_7 = arith.constant 0 : index
    %115 = vector.load %arg4[%c0_5, %c0_6, %c0_7] : memref<2x8x256xf32, #tpu.memory_space<vmem>>, vector<1x8x256xf32>
    %116 = vector.shape_cast %115 : vector<1x8x256xf32> to vector<8x256xf32>
    %117 = vector.shape_cast %114 : vector<8x256xf32> to vector<1x8x256xf32>
    tpu.vector_store %arg4[%c0_5, %c0_6, %c0_7], %117 {strides = array<i32>} : memref<2x8x256xf32, #tpu.memory_space<vmem>>, vector<1x8x256xf32>,
    %118 = vector.extract_strided_slice %0 {offsets = [4, 0], sizes = [1, 256], strides = [1, 1]} : vector<8x256xf32> to vector<1x256xf32>
    %119 = vector.shape_cast %118 : vector<1x256xf32> to vector<256xf32>
    %120 = vector.shape_cast %119 : vector<256xf32> to vector<1x256xf32>
    %121 = vector.extract_strided_slice %1 {offsets = [4, 0], sizes = [1, 256], strides = [1, 1]} : vector<8x256xf32> to vector<1x256xf32>
    %122 = vector.shape_cast %121 : vector<1x256xf32> to vector<256xf32>
    %123 = vector.shape_cast %122 : vector<256xf32> to vector<1x256xf32>
    %124 = vector.extract_strided_slice %2 {offsets = [4, 0], sizes = [1, 256], strides = [1, 1]} : vector<8x256xf32> to vector<1x256xf32>
    %125 = vector.shape_cast %124 : vector<1x256xf32> to vector<256xf32>
    %126 = vector.shape_cast %125 : vector<256xf32> to vector<1x256xf32>
    %127 = vector.broadcast %120 : vector<1x256xf32> to vector<8x256xf32>
    %128 = arith.mulf %6, %127 : vector<8x256xf32>
    %129 = arith.addf %42, %128 : vector<8x256xf32>
    %130 = vector.broadcast %123 : vector<1x256xf32> to vector<8x256xf32>
    %131 = arith.mulf %18, %130 : vector<8x256xf32>
    %132 = arith.addf %129, %131 : vector<8x256xf32>
    %133 = vector.broadcast %126 : vector<1x256xf32> to vector<8x256xf32>
    %134 = arith.mulf %30, %133 : vector<8x256xf32>
    %135 = arith.addf %132, %134 : vector<8x256xf32>
    %136 = vector.extract_strided_slice %0 {offsets = [5, 0], sizes = [1, 256], strides = [1, 1]} : vector<8x256xf32> to vector<1x256xf32>
    %137 = vector.shape_cast %136 : vector<1x256xf32> to vector<256xf32>
    %138 = vector.shape_cast %137 : vector<256xf32> to vector<1x256xf32>
    %139 = vector.extract_strided_slice %1 {offsets = [5, 0], sizes = [1, 256], strides = [1, 1]} : vector<8x256xf32> to vector<1x256xf32>
    %140 = vector.shape_cast %139 : vector<1x256xf32> to vector<256xf32>
    %141 = vector.shape_cast %140 : vector<256xf32> to vector<1x256xf32>
    %142 = vector.extract_strided_slice %2 {offsets = [5, 0], sizes = [1, 256], strides = [1, 1]} : vector<8x256xf32> to vector<1x256xf32>
    %143 = vector.shape_cast %142 : vector<1x256xf32> to vector<256xf32>
    %144 = vector.shape_cast %143 : vector<256xf32> to vector<1x256xf32>
    %145 = vector.broadcast %138 : vector<1x256xf32> to vector<8x256xf32>
    %146 = arith.mulf %9, %145 : vector<8x256xf32>
    %147 = arith.addf %135, %146 : vector<8x256xf32>
    %148 = vector.broadcast %141 : vector<1x256xf32> to vector<8x256xf32>
    %149 = arith.mulf %21, %148 : vector<8x256xf32>
    %150 = arith.addf %147, %149 : vector<8x256xf32>
    %151 = vector.broadcast %144 : vector<1x256xf32> to vector<8x256xf32>
    %152 = arith.mulf %33, %151 : vector<8x256xf32>
    %153 = arith.addf %150, %152 : vector<8x256xf32>
    %154 = vector.extract_strided_slice %0 {offsets = [6, 0], sizes = [1, 256], strides = [1, 1]} : vector<8x256xf32> to vector<1x256xf32>
    %155 = vector.shape_cast %154 : vector<1x256xf32> to vector<256xf32>
    %156 = vector.shape_cast %155 : vector<256xf32> to vector<1x256xf32>
    %157 = vector.extract_strided_slice %1 {offsets = [6, 0], sizes = [1, 256], strides = [1, 1]} : vector<8x256xf32> to vector<1x256xf32>
    %158 = vector.shape_cast %157 : vector<1x256xf32> to vector<256xf32>
    %159 = vector.shape_cast %158 : vector<256xf32> to vector<1x256xf32>
    %160 = vector.extract_strided_slice %2 {offsets = [6, 0], sizes = [1, 256], strides = [1, 1]} : vector<8x256xf32> to vector<1x256xf32>
    %161 = vector.shape_cast %160 : vector<1x256xf32> to vector<256xf32>
    %162 = vector.shape_cast %161 : vector<256xf32> to vector<1x256xf32>
    %163 = vector.broadcast %156 : vector<1x256xf32> to vector<8x256xf32>
    %164 = arith.mulf %12, %163 : vector<8x256xf32>
    %165 = arith.addf %153, %164 : vector<8x256xf32>
    %166 = vector.broadcast %159 : vector<1x256xf32> to vector<8x256xf32>
    %167 = arith.mulf %24, %166 : vector<8x256xf32>
    %168 = arith.addf %165, %167 : vector<8x256xf32>
    %169 = vector.broadcast %162 : vector<1x256xf32> to vector<8x256xf32>
    %170 = arith.mulf %36, %169 : vector<8x256xf32>
    %171 = arith.addf %168, %170 : vector<8x256xf32>
    %172 = vector.extract_strided_slice %0 {offsets = [7, 0], sizes = [1, 256], strides = [1, 1]} : vector<8x256xf32> to vector<1x256xf32>
    %173 = vector.shape_cast %172 : vector<1x256xf32> to vector<256xf32>
    %174 = vector.shape_cast %173 : vector<256xf32> to vector<1x256xf32>
    %175 = vector.extract_strided_slice %1 {offsets = [7, 0], sizes = [1, 256], strides = [1, 1]} : vector<8x256xf32> to vector<1x256xf32>
    %176 = vector.shape_cast %175 : vector<1x256xf32> to vector<256xf32>
    %177 = vector.shape_cast %176 : vector<256xf32> to vector<1x256xf32>
    %178 = vector.extract_strided_slice %2 {offsets = [7, 0], sizes = [1, 256], strides = [1, 1]} : vector<8x256xf32> to vector<1x256xf32>
    %179 = vector.shape_cast %178 : vector<1x256xf32> to vector<256xf32>
    %180 = vector.shape_cast %179 : vector<256xf32> to vector<1x256xf32>
    %181 = vector.broadcast %174 : vector<1x256xf32> to vector<8x256xf32>
    %182 = arith.mulf %15, %181 : vector<8x256xf32>
    %183 = arith.addf %171, %182 : vector<8x256xf32>
    %184 = vector.broadcast %177 : vector<1x256xf32> to vector<8x256xf32>
    %185 = arith.mulf %27, %184 : vector<8x256xf32>
    %186 = arith.addf %183, %185 : vector<8x256xf32>
    %187 = vector.broadcast %180 : vector<1x256xf32> to vector<8x256xf32>
    %188 = arith.mulf %39, %187 : vector<8x256xf32>
    %189 = arith.addf %186, %188 : vector<8x256xf32>
    %c1 = arith.constant 1 : index
    %c0_8 = arith.constant 0 : index
    %c0_9 = arith.constant 0 : index
    %190 = vector.load %arg4[%c1, %c0_8, %c0_9] : memref<2x8x256xf32, #tpu.memory_space<vmem>>, vector<1x8x256xf32>
    %191 = vector.shape_cast %190 : vector<1x8x256xf32> to vector<8x256xf32>
    %192 = vector.shape_cast %189 : vector<8x256xf32> to vector<1x8x256xf32>
    tpu.vector_store %arg4[%c1, %c0_8, %c0_9], %192 {strides = array<i32>} : memref<2x8x256xf32, #tpu.memory_space<vmem>>, vector<1x8x256xf32>,
    return
  }
  func.func @transform_0(%arg0: i32) -> (i32, i32) {
    %c0_i32 = arith.constant 0 : i32
    %c0_i32_0 = arith.constant 0 : i32
    %c0_i32_1 = arith.constant 0 : i32
    return %c0_i32, %c0_i32_0 : i32, i32
  }
  func.func @transform_1(%arg0: i32) -> (i32, i32) {
    %c0_i32 = arith.constant 0 : i32
    %c0_i32_0 = arith.constant 0 : i32
    %c0_i32_1 = arith.constant 0 : i32
    return %c0_i32, %c0_i32_0 : i32, i32
  }
  func.func @transform_2(%arg0: i32) -> (i32, i32) {
    %c0_i32 = arith.constant 0 : i32
    %c0_i32_0 = arith.constant 0 : i32
    %c0_i32_1 = arith.constant 0 : i32
    return %c0_i32, %c0_i32_0 : i32, i32
  }
  func.func @transform_3(%arg0: i32) -> (i32, i32, i32) {
    %c0_i32 = arith.constant 0 : i32
    %c0_i32_0 = arith.constant 0 : i32
    %c0_i32_1 = arith.constant 0 : i32
    %c0_i32_2 = arith.constant 0 : i32
    return %c0_i32, %c0_i32_0, %c0_i32_1 : i32, i32, i32
  }
}

</mosaic_0001>

<bundles_post_ra>
// kernel: tpu_custom_call.1
= control target key start
LH: loop header
LB: loop body
LE: loop exit
PB: predicated region body
PF: predicated region fallthrough
CT: control target
= control target key end

     0   :  { %8 = vsyncpa [#allocation3], 0  ;;  %s735_s0 = inlined_call_operand.hbm [shape: f32[8,256], index: 0, kind: input, shape index: {}]   ;;  %s736_s1 = inlined_call_operand.vmem [shape: f32[8,12], index: 1, kind: input, shape index: {}]   ;;  %s737_s2 = inlined_call_operand.vmem [shape: f32[8,1], index: 2, kind: input, shape index: {}]   ;;  %s738_s3 = inlined_call_operand.hbm [shape: f32[2,8,256], index: 3, kind: output, shape index: {}]  }
   0x1   :  { %9 = vsyncpa [#allocation4], 0  ;;  %s491_s12 = smov [#allocation2]   ;;  %s443_s16 = scalar_lea.hbm %s735_s0, 256 }
   0x2   :  { %s16_s13 = sshll.u32 %s491_s12, 4  ;;  %p444_p0 = scmp.ne.s32.totalorder %s735_s0, %s443_s16  ;;  %s17_s13 = int_to_ptr.vmem [resolvable:$true] %s16_s13 }
   0x3   :  { %p447_p1 = scmp.lt.u32.totalorder %s443_s16, %s735_s0 }
   0x5   :  { %p449_p2 = pnand %p447_p1, %p444_p0 }
   0x7   :  { %452 = shalt.err (!%p449_p2)
}
   0x8   :  { %s453_s21 = scalar_lea.vmem %s17_s13, 256  ;;  %p458_p4 = scmp.lt.s32.totalorder %s17_s13, %s17_s13 }
   0x9   :  { %p454_p3 = scmp.ne.s32.totalorder %s17_s13, %s453_s21  ;;  %p459_p5 = scmp.lt.s32.totalorder %s453_s21, %s453_s21 }
   0xb   :  { %p460_p6 = por %p459_p5, %p458_p4 }
   0xd   :  { %p461_p7 = pnand %p460_p6, %p454_p3 }
   0xf   :  { %464 = shalt.err (!%p461_p7)
}
  0x10   :  { %19 = dma.hbm_to_vmem [thread:$0]  %s735_s0, 256, %s17_s13, [#allocation3]  }
  0x11   :  { %487 = dma.done.wait [#allocation3], 256  }
  0x12   :  { %488 = vsyncadd [#allocation3], 4294967040  ;;  %v492_v0 = vmov 0   ;;  %v95_v1 = vld [vmem:[%s737_s2] sm:$0xff]  ;;  %v493_v3 = vmov 8   ;;  %v494_v4 = vmov 4   ;;  %v33_v16 = vlaneseq }
  0x13   :  { %431 = vset.pattern.permute.xlu1 %v492_v0  ;;  %429 = vset.pattern.permute.xlu0 %v492_v0  ;;  %v45_v2 = vld [vmem:[%s736_s1] sm:$0xff]  ;;  %v547_v5 = vld [vmem:[#allocation2 + $0x8] sm:$0xff]  ;;  %s495_s0 = smov 112   ;;  %v496_v7 = vmov 1   ;;  %v497_v8 = vmov 5   ;;  %s498_s1 = smov 111  }
  0x14   :  { %98 = vperm.xlu1 %431, %v95_v1   ;;  %48 = vperm.xlu0 %429, %v45_v2   ;;  %v549_v6 = vld [vmem:[#allocation2] sm:$0xff]  ;;  %v499_v9 = vmov 9   ;;  %v500_v10 = vmov 6   ;;  %v501_v11 = vmov 2   ;;  %v502_v12 = vmov 7   ;;  %s506_s2 = smov [#allocation5]  }
  0x15   :  { %v503_v13 = vmov 10   ;;  %v504_v14 = vmov 3   ;;  %v505_v15 = vmov 11   ;;  %v102_v17 = vshrl.u32 %v33_v16, 7  ;;  %s399_s28 = sshll.u32 %s506_s2, 4  ;;  %s400_s28 = int_to_ptr.vmem [resolvable:$true] %s399_s28 }
  0x16   :  { %v559_v22 = vand.u32 127, %v33_v16  ;;  %s465_s29 = scalar_lea.vmem %s400_s28, 512  ;;  %p470_p9 = scmp.lt.s32.totalorder %s400_s28, %s400_s28 }
  0x17   :  { %v555_v20 = vsub.s32 0, %v102_v17  ;;  %v557_v21 = vsub.s32 4, %v102_v17  ;;  %v561_v23 = vsub.s32 1, %v102_v17  ;;  %v563_v24 = vsub.s32 5, %v102_v17  ;;  %p466_p8 = scmp.ne.s32.totalorder %s400_s28, %s465_s29  ;;  %p471_p10 = scmp.lt.s32.totalorder %s465_s29, %s465_s29 }
  0x18   :  { %432 = vset.pattern.permute.xlu1 %v493_v3  ;;  %430 = vset.pattern.permute.xlu0 %v494_v4  ;;  %vm35_vm0 = vcmp.lt.s32.totalorder %v559_v22, 112  ;;  %v576_v31 = vsub.s32 2, %v102_v17  ;;  %v584_v35 = vsub.s32 6, %v102_v17  ;;  %vm42_vm1 = vcmp.lt.s32.totalorder %v559_v22, 111 }
  0x19   :  { %80 = vperm.xlu1 %432, %v45_v2   ;;  %64 = vperm.xlu0 %430, %v45_v2   ;;  %v104_v25 = vrot.slane %v549_v6, %v555_v20  ;;  %v108_v26 = vrot.slane %v547_v5, %v555_v20  ;;  %v250_v29 = vrot.slane %v549_v6, %v557_v21  ;;  %v589_v37 = vsub.s32 3, %v102_v17  ;;  %p472_p11 = por %p471_p10, %p470_p9 }
  0x1a   :  { %v254_v30 = vrot.slane %v547_v5, %v557_v21  ;;  %v144_v32 = vrot.slane %v547_v5, %v561_v23  ;;  %v290_v33 = vrot.slane %v547_v5, %v563_v24  ;;  %v140_v34 = vrot.slane %v549_v6, %v561_v23 }
  0x1b   :  { %v286_v36 = vrot.slane %v549_v6, %v563_v24  ;;  %v591_v38 = vsub.s32 7, %v102_v17  ;;  %v180_v43 = vrot.slane %v547_v5, %v576_v31  ;;  %v326_v44 = vrot.slane %v547_v5, %v584_v35  ;;  %p473_p12 = pnand %p472_p11, %p466_p8 }
  0x1c   :  { %v176_v53 = vrot.slane %v549_v6, %v576_v31  ;;  %v322_v54 = vrot.slane %v549_v6, %v584_v35  ;;  %v212_v61 = vrot.slane %v549_v6, %v589_v37 }
  0x1d   :  { %31 = vrot.lane.b32.xlu0 %v547_v5, %s495_s0  ;;  %29 = vrot.lane.b32.xlu1 %v549_v6, %s495_s0 }
  0x1e   :  { %433 = vset.pattern.permute.xlu1 %v496_v7  ;;  %434 = vset.pattern.permute.xlu0 %v497_v8 }
  0x21   :  { %38 = vrot.lane.b32.xlu0 %v549_v6, %s498_s1  ;;  %52 = vperm.xlu1 %433, %v45_v2  }
  0x25   :  { %68 = vperm.xlu0 %434, %v45_v2   ;;  %40 = vrot.lane.b32.xlu1 %v547_v5, %s498_s1 }
  0x26   :  { %435 = vset.pattern.permute.xlu1 %v499_v9 }
  0x29   :  { %437 = vset.pattern.permute.xlu0 %v500_v10  ;;  %84 = vperm.xlu1 %435, %v45_v2  }
  0x2a   :  { %72 = vperm.xlu0 %437, %v45_v2  }
  0x2d   :  { %436 = vset.pattern.permute.xlu1 %v501_v11 }
  0x2e   :  { %440 = vset.pattern.permute.xlu0 %v502_v12  ;;  %56 = vperm.xlu1 %436, %v45_v2  }
  0x2f   :  { %76 = vperm.xlu0 %440, %v45_v2  }
  0x32   :  { %438 = vset.pattern.permute.xlu1 %v503_v13 }
  0x33   :  { %88 = vperm.xlu1 %438, %v45_v2   ;;  %442 = vset.pattern.permute.xlu0 %v492_v0 }
  0x37   :  { %439 = vset.pattern.permute.xlu1 %v504_v14 }
  0x38   :  { %60 = vperm.xlu1 %439, %v45_v2  }
  0x3c   :  { %441 = vset.pattern.permute.xlu1 %v505_v15 }
  0x3d   :  { %92 = vperm.xlu1 %441, %v45_v2  }
  0x93   :  { %v99_v18 = vpop.permute.xlu1 %98  ;;  %v49_v19 = vpop.permute.xlu0 %48 }
  0x94   :  { %v109_v39 = vmul.f32 %v104_v25, %v49_v19  ;;  %v110_v40 = vmul.f32 %v108_v26, %v49_v19  ;;  %v255_v45 = vmul.f32 %v250_v29, %v49_v19  ;;  %v256_v46 = vmul.f32 %v254_v30, %v49_v19 }
  0x96   :  { %v111_v63 = vadd.f32 %v109_v39, %v99_v18  ;;  %v112_v0 = vadd.f32 %v110_v40, %v99_v18  ;;  %v257_v3 = vadd.f32 %v255_v45, %v99_v18  ;;  %v258_v4 = vadd.f32 %v256_v46, %v99_v18 }
  0x98   :  { %v569_v27 = vpop.permute.xlu1 %80  ;;  %v65_v28 = vpop.permute.xlu0 %64 }
  0x9c   :  { %v32_v41 = vpop.permute.xlu0 %31  ;;  %v30_v42 = vpop.permute.xlu1 %29 }
  0x9d   :  { %v599_v47 = vsel %vm35_vm0, %v30_v42, %v32_v41  ;;  %v603_v48 = vsel %vm35_vm0, %v32_v41, %v30_v42 }
  0x9e   :  { %v116_v49 = vrot.slane %v599_v47, %v555_v20  ;;  %v120_v50 = vrot.slane %v603_v48, %v555_v20  ;;  %v262_v51 = vrot.slane %v599_v47, %v557_v21  ;;  %v266_v52 = vrot.slane %v603_v48, %v557_v21 }
  0x9f   :  { %v152_v7 = vrot.slane %v599_v47, %v561_v23  ;;  %v156_v8 = vrot.slane %v603_v48, %v561_v23  ;;  %v298_v11 = vrot.slane %v599_v47, %v563_v24  ;;  %v302_v12 = vrot.slane %v603_v48, %v563_v24 }
  0xa0   :  { %v39_v57 = vpop.permute.xlu0 %38  ;;  %v53_v58 = vpop.permute.xlu1 %52  ;;  %v122_v59 = vmul.f32 %v120_v50, %v65_v28  ;;  %v268_v60 = vmul.f32 %v266_v52, %v65_v28  ;;  %v121_v1 = vmul.f32 %v116_v49, %v65_v28  ;;  %v267_v2 = vmul.f32 %v262_v51, %v65_v28 }
  0xa1   :  { %v145_v9 = vmul.f32 %v140_v34, %v53_v58  ;;  %v146_v10 = vmul.f32 %v144_v32, %v53_v58  ;;  %v291_v13 = vmul.f32 %v286_v36, %v53_v58  ;;  %v292_v14 = vmul.f32 %v290_v33, %v53_v58 }
  0xa2   :  { %v124_v16 = vadd.f32 %v122_v59, %v112_v0  ;;  %v270_v17 = vadd.f32 %v268_v60, %v258_v4  ;;  %v123_v19 = vadd.f32 %v121_v1, %v111_v63  ;;  %v269_v25 = vadd.f32 %v267_v2, %v257_v3 }
  0xa3   :  { %v188_v26 = vrot.slane %v599_v47, %v576_v31  ;;  %v192_v28 = vrot.slane %v603_v48, %v576_v31  ;;  %v334_v32 = vrot.slane %v599_v47, %v584_v35  ;;  %v338_v33 = vrot.slane %v603_v48, %v584_v35 }
  0xa4   :  { %v41_v15 = vpop.permute.xlu1 %40  ;;  %v69_v18 = vpop.permute.xlu0 %68  ;;  %v224_v39 = vrot.slane %v599_v47, %v589_v37  ;;  %v228_v22 = vrot.slane %v603_v48, %v589_v37 }
  0xa5   :  { %v639_v29 = vsel %vm42_vm1, %v39_v57, %v41_v15  ;;  %v643_v30 = vsel %vm42_vm1, %v41_v15, %v39_v57  ;;  %v157_v52 = vmul.f32 %v152_v7, %v69_v18  ;;  %v158_v57 = vmul.f32 %v156_v8, %v69_v18 }
  0xa6   :  { %v128_v34 = vrot.slane %v639_v29, %v555_v20  ;;  %v132_v36 = vrot.slane %v643_v30, %v555_v20  ;;  %v164_v40 = vrot.slane %v639_v29, %v561_v23  ;;  %v168_v41 = vrot.slane %v643_v30, %v561_v23 }
  0xa7   :  { %v274_v42 = vrot.slane %v639_v29, %v557_v21  ;;  %v278_v45 = vrot.slane %v643_v30, %v557_v21  ;;  %v310_v50 = vrot.slane %v639_v29, %v563_v24  ;;  %v314_v51 = vrot.slane %v643_v30, %v563_v24 }
  0xa8   :  { %v85_v46 = vpop.permute.xlu1 %84  ;;  %v133_v20 = vmul.f32 %v128_v34, %v569_v27  ;;  %v134_v49 = vmul.f32 %v132_v36, %v569_v27  ;;  %v303_v59 = vmul.f32 %v298_v11, %v69_v18  ;;  %v304_v60 = vmul.f32 %v302_v12, %v69_v18 }
  0xa9   :  { %v279_v23 = vmul.f32 %v274_v42, %v569_v27  ;;  %v280_v58 = vmul.f32 %v278_v45, %v569_v27  ;;  %v73_v0 = vpop.permute.xlu0 %72  ;;  %v169_v2 = vmul.f32 %v164_v40, %v85_v46  ;;  %v170_v3 = vmul.f32 %v168_v41, %v85_v46 }
  0xaa   :  { %v136_v21 = vadd.f32 %v134_v49, %v124_v16  ;;  %v135_v63 = vadd.f32 %v133_v20, %v123_v19  ;;  %v315_v36 = vmul.f32 %v310_v50, %v85_v46  ;;  %v316_v56 = vmul.f32 %v314_v51, %v85_v46 }
  0xab   :  { %v282_v1 = vadd.f32 %v280_v58, %v270_v17  ;;  %v281_v4 = vadd.f32 %v279_v23, %v269_v25  ;;  %v193_v62 = vmul.f32 %v188_v26, %v73_v0  ;;  %v194_v42 = vmul.f32 %v192_v28, %v73_v0 }
  0xac   :  { %v148_v15 = vadd.f32 %v146_v10, %v136_v21  ;;  %v147_v34 = vadd.f32 %v145_v9, %v135_v63  ;;  %v339_v11 = vmul.f32 %v334_v32, %v73_v0  ;;  %v340_v12 = vmul.f32 %v338_v33, %v73_v0 }
  0xad   :  { %v57_v24 = vpop.permute.xlu1 %56  ;;  %v294_v7 = vadd.f32 %v292_v14, %v282_v1  ;;  %v293_v8 = vadd.f32 %v291_v13, %v281_v4  ;;  %v200_v17 = vrot.slane %v639_v29, %v576_v31  ;;  %v204_v10 = vrot.slane %v643_v30, %v576_v31 }
  0xae   :  { %v160_v55 = vadd.f32 %v158_v57, %v148_v15  ;;  %v159_v27 = vadd.f32 %v157_v52, %v147_v34  ;;  %v181_v13 = vmul.f32 %v176_v53, %v57_v24  ;;  %v182_v14 = vmul.f32 %v180_v43, %v57_v24 }
  0xaf   :  { %v306_v16 = vadd.f32 %v304_v60, %v294_v7  ;;  %v305_v18 = vadd.f32 %v303_v59, %v293_v8  ;;  %v327_v28 = vmul.f32 %v322_v54, %v57_v24  ;;  %v328_v32 = vmul.f32 %v326_v44, %v57_v24 }
  0xb0   :  { %v171_v9 = vadd.f32 %v169_v2, %v159_v27  ;;  %v172_v19 = vadd.f32 %v170_v3, %v160_v55  ;;  %v346_v53 = vrot.slane %v639_v29, %v584_v35  ;;  %v350_v31 = vrot.slane %v643_v30, %v584_v35 }
  0xb1   :  { %v317_v25 = vadd.f32 %v315_v36, %v305_v18  ;;  %v318_v26 = vadd.f32 %v316_v56, %v306_v16  ;;  %v77_v56 = vpop.permute.xlu0 %76  ;;  %v370_v35 = vrot.slane %v599_v47, %v591_v38  ;;  %v374_v23 = vrot.slane %v603_v48, %v591_v38 }
  0xb2   :  { %v89_v33 = vpop.permute.xlu1 %88  ;;  %v183_v55 = vadd.f32 %v181_v13, %v171_v9  ;;  %v184_v40 = vadd.f32 %v182_v14, %v172_v19  ;;  %v229_v52 = vmul.f32 %v224_v39, %v77_v56  ;;  %v230_v57 = vmul.f32 %v228_v22, %v77_v56 }
  0xb3   :  { %v329_v43 = vadd.f32 %v327_v28, %v317_v25  ;;  %v330_v41 = vadd.f32 %v328_v32, %v318_v26  ;;  %v205_v45 = vmul.f32 %v200_v17, %v89_v33  ;;  %v206_v46 = vmul.f32 %v204_v10, %v89_v33 }
  0xb4   :  { %v196_v20 = vadd.f32 %v194_v42, %v184_v40  ;;  %v195_v54 = vadd.f32 %v193_v62, %v183_v55  ;;  %v351_v49 = vmul.f32 %v346_v53, %v89_v33  ;;  %v352_v50 = vmul.f32 %v350_v31, %v89_v33 }
  0xb5   :  { %v342_v51 = vadd.f32 %v340_v12, %v330_v41  ;;  %v341_v44 = vadd.f32 %v339_v11, %v329_v43  ;;  %v739_v39 = vrot.slane %v547_v5, %v589_v37  ;;  %v740_v22 = vrot.slane %v549_v6, %v591_v38 }
  0xb6   :  { %v207_v62 = vadd.f32 %v205_v45, %v195_v54  ;;  %v208_v59 = vadd.f32 %v206_v46, %v196_v20  ;;  %v741_v48 = vrot.slane %v547_v5, %v591_v38  ;;  %v375_v2 = vmul.f32 %v370_v35, %v77_v56 }
  0xb7   :  { %v61_v58 = vpop.permute.xlu1 %60  ;;  %v353_v63 = vadd.f32 %v351_v49, %v341_v44  ;;  %v354_v0 = vadd.f32 %v352_v50, %v342_v51  ;;  %v376_v3 = vmul.f32 %v374_v23, %v77_v56  ;;  %v236_v36 = vrot.slane %v639_v29, %v589_v37 }
  0xb8   :  { %v217_v60 = vmul.f32 %v212_v61, %v61_v58  ;;  %v218_v21 = vmul.f32 %v739_v39, %v61_v58  ;;  %v363_v47 = vmul.f32 %v740_v22, %v61_v58  ;;  %v364_v1 = vmul.f32 %v741_v48, %v61_v58 }
  0xb9   :  { %v240_v24 = vrot.slane %v643_v30, %v589_v37  ;;  %v382_v6 = vrot.slane %v639_v29, %v591_v38  ;;  %v386_v5 = vrot.slane %v643_v30, %v591_v38 }
  0xba   :  { %v219_v4 = vadd.f32 %v217_v60, %v207_v62  ;;  %v220_v15 = vadd.f32 %v218_v21, %v208_v59  ;;  %v365_v34 = vadd.f32 %v363_v47, %v353_v63  ;;  %v366_v61 = vadd.f32 %v364_v1, %v354_v0 }
  0xbc   :  { %v232_v7 = vadd.f32 %v230_v57, %v220_v15  ;;  %v93_v8 = vpop.permute.xlu1 %92  ;;  %v231_v42 = vadd.f32 %v229_v52, %v219_v4  ;;  %v378_v27 = vadd.f32 %v376_v3, %v366_v61  ;;  %v377_v16 = vadd.f32 %v375_v2, %v365_v34 }
  0xbd   :  { %v241_v11 = vmul.f32 %v236_v36, %v93_v8  ;;  %v242_v12 = vmul.f32 %v240_v24, %v93_v8  ;;  %v387_v18 = vmul.f32 %v382_v6, %v93_v8  ;;  %v388_v17 = vmul.f32 %v386_v5, %v93_v8 }
  0xbf   :  { %v243_v10 = vadd.f32 %v241_v11, %v231_v42  ;;  %v244_v9 = vadd.f32 %v242_v12, %v232_v7  ;;  %v389_v37 = vadd.f32 %v387_v18, %v377_v16  ;;  %v390_v19 = vadd.f32 %v388_v17, %v378_v27 }
  0xc1   :  { %245 = vst [vmem:[#allocation5] sm:$0xff] %v243_v10  ;;  %246 = vst [vmem:[#allocation5 + $0x8] sm:$0xff] %v244_v9 }
  0xc2   :  { %392 = vst [vmem:[#allocation5 + $0x10] sm:$0xff] %v389_v37  ;;  %393 = vst [vmem:[#allocation5 + $0x18] sm:$0xff] %v390_v19 }
  0xc3   :  { %476 = shalt.err (!%p473_p12)
}
  0xc4   :  { %s477_s5 = scalar_lea.hbm %s738_s3, 512 }
  0xc5   :  { %p478_p13 = scmp.ne.s32.totalorder %s738_s3, %s477_s5  ;;  %p481_p0 = scmp.lt.u32.totalorder %s477_s5, %s738_s3 }
  0xc7   :  { %p483_p1 = pnand %p481_p0, %p478_p13 }
  0xc9   :  { %486 = shalt.err (!%p483_p1)
}
  0xca   :  { %s507_s10 = smov 256   ;;  %s508_s11 = smov 16  }
  0xcb   :  { %405 = dma.vmem_to_hbm [thread:$0]  %s400_s28, 512, %s738_s3, [#allocation4], %s507_s10, %s507_s10, %s508_s11  }
  0xcc   :  { %489 = dma.done.wait [#allocation4], 512  }
  0xcd   :  { %490 = vsyncadd [#allocation4], 4294966784 }
  0xce   :  { %409 = vsyncpa [#allocation3], 1 }
  0xcf   :  { %410 = vsyncpa [#allocation4], 1 }

</bundles_post_ra>
